<compile_context>
chip_gen: v6e
topology: v6e:2x2x1
jax: 0.10.0
libtpu: 0.0.40
codegen_flags: <defaults>
</compile_context>

<pallas_src>
import math

import jax
import jax.numpy as jnp
from jax.experimental import pallas as pl
from jax.experimental.pallas import tpu as pltpu

KSIZE = 3
EPS = 1e-5


def _make_kernel(apply_relu, add_residual, compute_dtype):
    """Conv (as MXU matmul) + bias + InstanceNorm (+ReLU, +residual), one sample."""

    def kernel(*refs):
        if add_residual:
            p_ref, w_ref, b_ref, res_ref, out_ref = refs
        else:
            p_ref, w_ref, b_ref, out_ref = refs

        patches = p_ref[0]            # (C*9, HW) lane-dense
        w_mat = w_ref[...]            # (C, C*9), VMEM-resident across the grid

        # 3x3 conv == one MXU matmul over the im2col patches, f32 accumulate.
        acc = jnp.dot(w_mat.astype(compute_dtype),
                      patches.astype(compute_dtype),
                      preferred_element_type=jnp.float32)     # (C, HW)
        acc = acc + b_ref[...]        # (C, 1) bias column, single broadcast add

        # InstanceNorm2d (no affine, biased variance, eps=1e-5): per-channel
        # stats over the lane axis; one centered pass, rsqrt on the EUP.
        mean = jnp.mean(acc, axis=-1, keepdims=True)
        centered = acc - mean
        var = jnp.mean(centered * centered, axis=-1, keepdims=True)
        y = centered * jax.lax.rsqrt(var + EPS)

        if apply_relu:
            y = jnp.maximum(y, 0.0)
        if add_residual:
            y = y + res_ref[0]        # residual tile shares the lane-dense layout

        out_ref[0] = y.astype(out_ref.dtype)

    return kernel


def _conv_in_stage(patches, w_mat, b_col, *, apply_relu, residual=None,
                   compute_dtype=jnp.float32):
    """One Conv3x3 + InstanceNorm (+ReLU / +residual) stage via pallas_call.

    patches:  (N, C*9, HW) im2col of the reflection-padded input, f32
    w_mat:    (C, C*9) conv weight reshaped from OIHW, f32
    b_col:    (C, 1) conv bias, f32
    residual: optional (N, C, HW) tensor added after the norm.
    """
    N, C9, HW = patches.shape
    C = w_mat.shape[0]

    kernel = _make_kernel(apply_relu, residual is not None, compute_dtype)

    in_specs = [
        pl.BlockSpec((1, C9, HW), lambda n: (n, 0, 0)),   # per-sample patches
        pl.BlockSpec((C, C9), lambda n: (0, 0)),          # weights (VMEM, reused)
        pl.BlockSpec((C, 1), lambda n: (0, 0)),           # bias column (VMEM)
    ]
    args = [patches, w_mat, b_col]
    if residual is not None:
        in_specs.append(pl.BlockSpec((1, C, HW), lambda n: (n, 0, 0)))
        args.append(residual)

    return pl.pallas_call(
        kernel,
        out_shape=jax.ShapeDtypeStruct((N, C, HW), jnp.float32),
        grid=(N,),
        in_specs=in_specs,
        out_specs=pl.BlockSpec((1, C, HW), lambda n: (n, 0, 0)),
        compiler_params=pltpu.CompilerParams(
            dimension_semantics=("parallel",)),   # batch is embarrassingly parallel
    )(*args)


def _reflect_pad1(x):
    return jnp.pad(x, ((0, 0), (0, 0), (1, 1), (1, 1)), mode="reflect")


def _im2col3x3(x_pad):
    """(N, C, H+2, W+2) -> (N, C*9, H*W) patch matrix for a VALID 3x3 conv.

    Tap ordering matches w.reshape(C, C*9) of an OIHW weight: index ci*9+dy*3+dx.
    """
    N, C, Hp, Wp = x_pad.shape
    H, W = Hp - 2, Wp - 2
    taps = [x_pad[:, :, dy:dy + H, dx:dx + W].reshape(N, C, H * W)
            for dy in range(KSIZE) for dx in range(KSIZE)]
    return jnp.stack(taps, axis=2).reshape(N, C * KSIZE * KSIZE, H * W)


@jax.jit
def resblock_forward(x, w1, b1, w2, b2):
    """x: (N, C, H, W) f32. Returns x + net(x)."""
    N, C, H, W = x.shape
    HW = H * W
    w1_mat, w2_mat = w1.reshape(C, C * 9), w2.reshape(C, C * 9)
    b1_col, b2_col = b1.reshape(C, 1), b2.reshape(C, 1)

    # Stage 1: ReflPad -> Conv -> InstanceNorm -> ReLU  (Dropout == identity).
    p1 = _im2col3x3(_reflect_pad1(x))
    h = _conv_in_stage(p1, w1_mat, b1_col, apply_relu=True)

    # Stage 2: ReflPad -> Conv -> InstanceNorm, then residual add with x.
    # TODO(synk): fusing both stages into one pallas_call (in-kernel reflection
    # padding of the VMEM-resident intermediate) would remove this HBM
    # round-trip; kept as two calls to avoid minor-dim relayouts in-kernel.
    p2 = _im2col3x3(_reflect_pad1(h.reshape(N, C, H, W)))
    out = _conv_in_stage(p2, w2_mat, b2_col, apply_relu=False,
                         residual=x.reshape(N, C, HW))
    return out.reshape(N, C, H, W)


def resblock_reference(x, w1, b1, w2, b2):
    """Pure-JAX reference matching PyTorch eval-mode semantics."""
    def conv_in(h, w, b):
        hp = _reflect_pad1(h)
        y = jax.lax.conv_general_dilated(
            hp, w, window_strides=(1, 1), padding="VALID",
            dimension_numbers=("NCHW", "OIHW", "NCHW"))
        y = y + b[None, :, None, None]
        mean = y.mean(axis=(2, 3), keepdims=True)
        var = y.var(axis=(2, 3), keepdims=True)  # biased, like InstanceNorm2d
        return (y - mean) / jnp.sqrt(var + EPS)

    h = jnp.maximum(conv_in(x, w1, b1), 0.0)
    return x + conv_in(h, w2, b2)


def init_params(key, C):
    """Deterministic init mimicking PyTorch Conv2d defaults (uniform +-1/sqrt(fan_in))."""
    fan_in = C * KSIZE * KSIZE
    bound = 1.0 / math.sqrt(fan_in)
    k1, k2, k3, k4 = jax.random.split(key, 4)
    w1 = jax.random.uniform(k1, (C, C, KSIZE, KSIZE), jnp.float32, -bound, bound)
    b1 = jax.random.uniform(k2, (C,), jnp.float32, -bound, bound)
    w2 = jax.random.uniform(k3, (C, C, KSIZE, KSIZE), jnp.float32, -bound, bound)
    b2 = jax.random.uniform(k4, (C,), jnp.float32, -bound, bound)
    return w1, b1, w2, b2


if __name__ == "__main__":
    N, C, H, W = 2, 4, 16, 16
    key = jax.random.PRNGKey(0)
    kx, kp = jax.random.split(key)
    x = jax.random.normal(kx, (N, C, H, W), dtype=jnp.float32)
    w1, b1, w2, b2 = init_params(kp, C)

    out = resblock_forward(x, w1, b1, w2, b2)
    out = jax.block_until_ready(out)

    ref = resblock_reference(x, w1, b1, w2, b2)
    assert out.shape == (N, C, H, W)
    # Tolerance covers MXU f32 multi-pass matmul vs. XLA conv rounding.
    assert jnp.max(jnp.abs(out - ref)) < 5e-3, "Pallas output mismatch vs JAX reference"

    print("KERNEL_OK")
</pallas_src>

<mosaic_0001>
module attributes {stable_mosaic.version = 11 : i64} {
  func.func @kernel(%arg0: i32, %arg1: memref<1x36x256xf32, #tpu.memory_space<vmem>>, %arg2: memref<4x36xf32, #tpu.memory_space<vmem>>, %arg3: memref<4x1xf32, #tpu.memory_space<vmem>>, %arg4: memref<1x4x256xf32, #tpu.memory_space<vmem>>) attributes {dimension_semantics = [#tpu.dimension_semantics<parallel>], iteration_bounds = array<i64: 2>, scalar_prefetch = 0 : i64, scratch_operands = 0 : i64, tpu.core_type = #tpu.core_type<tc>, window_params = [{transform_indices = @transform_0, window_bounds = array<i64: 1, 36, 256>}, {pipeline_mode = #tpu.pipeline_mode<synchronous>, transform_indices = @transform_1, window_bounds = array<i64: 4, 36>}, {pipeline_mode = #tpu.pipeline_mode<synchronous>, transform_indices = @transform_2, window_bounds = array<i64: 4, 1>}, {transform_indices = @transform_3, window_bounds = array<i64: 1, 4, 256>}]} {
    %c0 = arith.constant 0 : index
    %c0_0 = arith.constant 0 : index
    %c0_1 = arith.constant 0 : index
    %0 = vector.load %arg1[%c0, %c0_0, %c0_1] : memref<1x36x256xf32, #tpu.memory_space<vmem>>, vector<1x36x256xf32>
    %1 = vector.shape_cast %0 : vector<1x36x256xf32> to vector<36x256xf32>
    %c0_2 = arith.constant 0 : index
    %c0_3 = arith.constant 0 : index
    %2 = vector.load %arg2[%c0_2, %c0_3] : memref<4x36xf32, #tpu.memory_space<vmem>>, vector<4x36xf32>
    %cst = arith.constant dense<0.000000e+00> : vector<4x256xf32>
    %3 = tpu.matmul %2, %1, %cst {dimension_numbers = #tpu.dot_dimension_numbers<[1], [0], [0], [1], [0, 0, 1, 1], [], []>} : vector<4x36xf32>, vector<36x256xf32>, vector<4x256xf32> -> vector<4x256xf32>
    %c0_4 = arith.constant 0 : index
    %c0_5 = arith.constant 0 : index
    %4 = vector.load %arg3[%c0_4, %c0_5] : memref<4x1xf32, #tpu.memory_space<vmem>>, vector<4x1xf32>
    %5 = vector.broadcast %4 : vector<4x1xf32> to vector<4x256xf32>
    %6 = arith.addf %3, %5 : vector<4x256xf32>
    %cst_6 = arith.constant dense<0.000000e+00> : vector<4xf32>
    %7 = vector.multi_reduction <add>, %6, %cst_6 [1] : vector<4x256xf32> to vector<4xf32>
    %8 = vector.shape_cast %7 : vector<4xf32> to vector<4x1xf32>
    %cst_7 = arith.constant 2.560000e+02 : f32
    %9 = vector.broadcast %cst_7 : f32 to vector<4x1xf32>
    %10 = arith.divf %8, %9 : vector<4x1xf32>
    %11 = vector.broadcast %10 : vector<4x1xf32> to vector<4x256xf32>
    %12 = arith.subf %6, %11 : vector<4x256xf32>
    %13 = arith.mulf %12, %12 : vector<4x256xf32>
    %cst_8 = arith.constant dense<0.000000e+00> : vector<4xf32>
    %14 = vector.multi_reduction <add>, %13, %cst_8 [1] : vector<4x256xf32> to vector<4xf32>
    %15 = vector.shape_cast %14 : vector<4xf32> to vector<4x1xf32>
    %cst_9 = arith.constant 2.560000e+02 : f32
    %16 = vector.broadcast %cst_9 : f32 to vector<4x1xf32>
    %17 = arith.divf %15, %16 : vector<4x1xf32>
    %cst_10 = arith.constant 9.99999974E-6 : f32
    %18 = vector.broadcast %cst_10 : f32 to vector<4x1xf32>
    %19 = arith.addf %17, %18 : vector<4x1xf32>
    %20 = math.rsqrt %19 : vector<4x1xf32>
    %21 = vector.broadcast %20 : vector<4x1xf32> to vector<4x256xf32>
    %22 = arith.mulf %12, %21 : vector<4x256xf32>
    %cst_11 = arith.constant 0.000000e+00 : f32
    %23 = vector.broadcast %cst_11 : f32 to vector<4x256xf32>
    %24 = arith.maximumf %22, %23 : vector<4x256xf32>
    %c0_12 = arith.constant 0 : index
    %c0_13 = arith.constant 0 : index
    %c0_14 = arith.constant 0 : index
    %25 = vector.load %arg4[%c0_12, %c0_13, %c0_14] : memref<1x4x256xf32, #tpu.memory_space<vmem>>, vector<1x4x256xf32>
    %26 = vector.shape_cast %25 : vector<1x4x256xf32> to vector<4x256xf32>
    %27 = vector.shape_cast %24 : vector<4x256xf32> to vector<1x4x256xf32>
    tpu.vector_store %arg4[%c0_12, %c0_13, %c0_14], %27 {strides = array<i32>} : memref<1x4x256xf32, #tpu.memory_space<vmem>>, vector<1x4x256xf32>,
    return
  }
  func.func @transform_0(%arg0: i32) -> (i32, i32, i32) {
    %c0_i32 = arith.constant 0 : i32
    %c0_i32_0 = arith.constant 0 : i32
    %c0_i32_1 = arith.constant 0 : i32
    return %arg0, %c0_i32, %c0_i32_0 : i32, i32, i32
  }
  func.func @transform_1(%arg0: i32) -> (i32, i32) {
    %c0_i32 = arith.constant 0 : i32
    %c0_i32_0 = arith.constant 0 : i32
    %c0_i32_1 = arith.constant 0 : i32
    return %c0_i32, %c0_i32_0 : i32, i32
  }
  func.func @transform_2(%arg0: i32) -> (i32, i32) {
    %c0_i32 = arith.constant 0 : i32
    %c0_i32_0 = arith.constant 0 : i32
    %c0_i32_1 = arith.constant 0 : i32
    return %c0_i32, %c0_i32_0 : i32, i32
  }
  func.func @transform_3(%arg0: i32) -> (i32, i32, i32) {
    %c0_i32 = arith.constant 0 : i32
    %c0_i32_0 = arith.constant 0 : i32
    %c0_i32_1 = arith.constant 0 : i32
    return %arg0, %c0_i32, %c0_i32_0 : i32, i32, i32
  }
}

module attributes {stable_mosaic.version = 11 : i64} {
  func.func @kernel(%arg0: i32, %arg1: memref<1x36x256xf32, #tpu.memory_space<vmem>>, %arg2: memref<4x36xf32, #tpu.memory_space<vmem>>, %arg3: memref<4x1xf32, #tpu.memory_space<vmem>>, %arg4: memref<1x4x256xf32, #tpu.memory_space<vmem>>, %arg5: memref<1x4x256xf32, #tpu.memory_space<vmem>>) attributes {dimension_semantics = [#tpu.dimension_semantics<parallel>], iteration_bounds = array<i64: 2>, scalar_prefetch = 0 : i64, scratch_operands = 0 : i64, tpu.core_type = #tpu.core_type<tc>, window_params = [{transform_indices = @transform_0, window_bounds = array<i64: 1, 36, 256>}, {pipeline_mode = #tpu.pipeline_mode<synchronous>, transform_indices = @transform_1, window_bounds = array<i64: 4, 36>}, {pipeline_mode = #tpu.pipeline_mode<synchronous>, transform_indices = @transform_2, window_bounds = array<i64: 4, 1>}, {transform_indices = @transform_3, window_bounds = array<i64: 1, 4, 256>}, {transform_indices = @transform_4, window_bounds = array<i64: 1, 4, 256>}]} {
    %c0 = arith.constant 0 : index
    %c0_0 = arith.constant 0 : index
    %c0_1 = arith.constant 0 : index
    %0 = vector.load %arg1[%c0, %c0_0, %c0_1] : memref<1x36x256xf32, #tpu.memory_space<vmem>>, vector<1x36x256xf32>
    %1 = vector.shape_cast %0 : vector<1x36x256xf32> to vector<36x256xf32>
    %c0_2 = arith.constant 0 : index
    %c0_3 = arith.constant 0 : index
    %2 = vector.load %arg2[%c0_2, %c0_3] : memref<4x36xf32, #tpu.memory_space<vmem>>, vector<4x36xf32>
    %cst = arith.constant dense<0.000000e+00> : vector<4x256xf32>
    %3 = tpu.matmul %2, %1, %cst {dimension_numbers = #tpu.dot_dimension_numbers<[1], [0], [0], [1], [0, 0, 1, 1], [], []>} : vector<4x36xf32>, vector<36x256xf32>, vector<4x256xf32> -> vector<4x256xf32>
    %c0_4 = arith.constant 0 : index
    %c0_5 = arith.constant 0 : index
    %4 = vector.load %arg3[%c0_4, %c0_5] : memref<4x1xf32, #tpu.memory_space<vmem>>, vector<4x1xf32>
    %5 = vector.broadcast %4 : vector<4x1xf32> to vector<4x256xf32>
    %6 = arith.addf %3, %5 : vector<4x256xf32>
    %cst_6 = arith.constant dense<0.000000e+00> : vector<4xf32>
    %7 = vector.multi_reduction <add>, %6, %cst_6 [1] : vector<4x256xf32> to vector<4xf32>
    %8 = vector.shape_cast %7 : vector<4xf32> to vector<4x1xf32>
    %cst_7 = arith.constant 2.560000e+02 : f32
    %9 = vector.broadcast %cst_7 : f32 to vector<4x1xf32>
    %10 = arith.divf %8, %9 : vector<4x1xf32>
    %11 = vector.broadcast %10 : vector<4x1xf32> to vector<4x256xf32>
    %12 = arith.subf %6, %11 : vector<4x256xf32>
    %13 = arith.mulf %12, %12 : vector<4x256xf32>
    %cst_8 = arith.constant dense<0.000000e+00> : vector<4xf32>
    %14 = vector.multi_reduction <add>, %13, %cst_8 [1] : vector<4x256xf32> to vector<4xf32>
    %15 = vector.shape_cast %14 : vector<4xf32> to vector<4x1xf32>
    %cst_9 = arith.constant 2.560000e+02 : f32
    %16 = vector.broadcast %cst_9 : f32 to vector<4x1xf32>
    %17 = arith.divf %15, %16 : vector<4x1xf32>
    %cst_10 = arith.constant 9.99999974E-6 : f32
    %18 = vector.broadcast %cst_10 : f32 to vector<4x1xf32>
    %19 = arith.addf %17, %18 : vector<4x1xf32>
    %20 = math.rsqrt %19 : vector<4x1xf32>
    %21 = vector.broadcast %20 : vector<4x1xf32> to vector<4x256xf32>
    %22 = arith.mulf %12, %21 : vector<4x256xf32>
    %c0_11 = arith.constant 0 : index
    %c0_12 = arith.constant 0 : index
    %c0_13 = arith.constant 0 : index
    %23 = vector.load %arg4[%c0_11, %c0_12, %c0_13] : memref<1x4x256xf32, #tpu.memory_space<vmem>>, vector<1x4x256xf32>
    %24 = vector.shape_cast %23 : vector<1x4x256xf32> to vector<4x256xf32>
    %25 = arith.addf %22, %24 : vector<4x256xf32>
    %c0_14 = arith.constant 0 : index
    %c0_15 = arith.constant 0 : index
    %c0_16 = arith.constant 0 : index
    %26 = vector.load %arg5[%c0_14, %c0_15, %c0_16] : memref<1x4x256xf32, #tpu.memory_space<vmem>>, vector<1x4x256xf32>
    %27 = vector.shape_cast %26 : vector<1x4x256xf32> to vector<4x256xf32>
    %28 = vector.shape_cast %25 : vector<4x256xf32> to vector<1x4x256xf32>
    tpu.vector_store %arg5[%c0_14, %c0_15, %c0_16], %28 {strides = array<i32>} : memref<1x4x256xf32, #tpu.memory_space<vmem>>, vector<1x4x256xf32>,
    return
  }
  func.func @transform_0(%arg0: i32) -> (i32, i32, i32) {
    %c0_i32 = arith.constant 0 : i32
    %c0_i32_0 = arith.constant 0 : i32
    %c0_i32_1 = arith.constant 0 : i32
    return %arg0, %c0_i32, %c0_i32_0 : i32, i32, i32
  }
  func.func @transform_1(%arg0: i32) -> (i32, i32) {
    %c0_i32 = arith.constant 0 : i32
    %c0_i32_0 = arith.constant 0 : i32
    %c0_i32_1 = arith.constant 0 : i32
    return %c0_i32, %c0_i32_0 : i32, i32
  }
  func.func @transform_2(%arg0: i32) -> (i32, i32) {
    %c0_i32 = arith.constant 0 : i32
    %c0_i32_0 = arith.constant 0 : i32
    %c0_i32_1 = arith.constant 0 : i32
    return %c0_i32, %c0_i32_0 : i32, i32
  }
  func.func @transform_3(%arg0: i32) -> (i32, i32, i32) {
    %c0_i32 = arith.constant 0 : i32
    %c0_i32_0 = arith.constant 0 : i32
    %c0_i32_1 = arith.constant 0 : i32
    return %arg0, %c0_i32, %c0_i32_0 : i32, i32, i32
  }
  func.func @transform_4(%arg0: i32) -> (i32, i32, i32) {
    %c0_i32 = arith.constant 0 : i32
    %c0_i32_0 = arith.constant 0 : i32
    %c0_i32_1 = arith.constant 0 : i32
    return %arg0, %c0_i32, %c0_i32_0 : i32, i32, i32
  }
}

</mosaic_0001>

<bundles_post_ra>
// kernel: resblock_forward.2
= control target key start
LH: loop header
LB: loop body
LE: loop exit
PB: predicated region body
PF: predicated region fallthrough
CT: control target
= control target key end

     0   :  { %s411_s12 = smov 0   ;;  %s444_s0 = inlined_call_operand.vmem [shape: f32[2,36,256], index: 0, kind: input, shape index: {}]   ;;  %s445_s1 = inlined_call_operand.vmem [shape: f32[4,36], index: 1, kind: input, shape index: {}]   ;;  %s446_s2 = inlined_call_operand.vmem [shape: f32[4,1], index: 2, kind: input, shape index: {}]   ;;  %s447_s3 = inlined_call_operand.vmem [shape: f32[2,4,256], index: 3, kind: output, shape index: {}]  }
   0x1 LB: > { %s353_s13 = sadd.s32 4294967295, %s387_s12   ;;  %p357_p0 = scmp.ge.s32.totalorder %s387_s12, 1  ;;  %s387_s12 = sphi %s411_s12, %s13_s12  }
   0x2   : > { %p137_p1 = scmp.lt.s32.totalorder %s387_s12, 3 }
   0x4   : > { %p138_p2 = pnand %p357_p0, %p137_p1 }
   0x5   : > { %p161_p3 = scmp.lt.s32.totalorder (!%p138_p2), %s353_s13, 1 }
   0x6   : > { %141 = sbr.rel (%p138_p2) target bundleno = 536 (0x218), region = 32 }
   0xb   : > { %v389_v0 = vmov 0.0   ;;  %v182_v1 = vld [vmem:[%s446_s2] sm:$0xf]  ;;  %s449_s13 = smov (!%p161_p3, %s353_s13), 1  ;;  %v390_v2 = vmov 0   ;;  %vm192_vm0 = vcmask 1043456  }
   0xc   : > { %263 = vmatprep.mubr.f32.mxu0 %v389_v0  ;;  %378 = vset.pattern.permute.xlu0 %v390_v2  ;;  %s367_s16 = smul.u32 80, %s449_s13  ;;  %v181_v13 = vld [vmem:[%s445_s1] sm:$0xf]  ;;  %vm188_vm1 = vcmask 293888   ;;  %s366_s22 = sshll.u32 %s449_s13, 3 }
   0xd   : > { %185 = vperm.xlu0 %378, %v182_v1   ;;  %s170_s25 = scalar_lea.vmem %s447_s3, %s366_s22 }
   0xe   : > { %s165_s19 = scalar_lea.vmem %s444_s0, %s367_s16 }
   0xf   : > { %v180_v3 = vld [vmem:[%s165_s19 + $0x48] sm:$0xf]  ;;  %v179_v4 = vld [vmem:[%s165_s19 + $0x40] sm:$0xf]  ;;  %v178_v5 = vld [vmem:[%s165_s19 + $0x38] sm:$0xff] }
  0x10   : > { %361 = vmatprep.subr.msk.mxu0 %vm192_vm0, %v180_v3  ;;  %v177_v6 = vld [vmem:[%s165_s19 + $0x30] sm:$0xff]  ;;  %v176_v7 = vld [vmem:[%s165_s19 + $0x28] sm:$0xff]  ;;  %v175_v8 = vld [vmem:[%s165_s19 + $0x20] sm:$0xff] }
  0x11   : > { %362 = vmatpush1.msk.msra.mxu0 %vm192_vm0, %v179_v4  ;;  %v174_v9 = vld [vmem:[%s165_s19 + $0x18] sm:$0xff]  ;;  %v173_v10 = vld [vmem:[%s165_s19 + $0x10] sm:$0xff]  ;;  %v172_v11 = vld [vmem:[%s165_s19 + $0x8] sm:$0xff] }
  0x12   : > { %223 = vmatprep.subr.mxu0 %v178_v5  ;;  %v171_v12 = vld [vmem:[%s165_s19] sm:$0xff] }
  0x13   : > { %224 = vmatpush1.msra.mxu0 %v177_v6 }
  0x14   : > { %225 = vmatprep.subr.mxu0 %v176_v7 }
  0x15   : > { %226 = vmatpush1.msra.mxu0 %v175_v8 }
  0x16   : > { %227 = vmatprep.subr.mxu0 %v174_v9 }
  0x17   : > { %228 = vmatpush1.msra.mxu0 %v173_v10 }
  0x18   : > { %229 = vmatprep.subr.mxu0 %v172_v11 }
  0x19   : > { %230 = vmatpush1.msra.mxu0 %v171_v12 }
  0x1a   : > { %363 = vmatmul.mubr.msk.f32.vlgmr.msra.gmra.mxu0 %vm188_vm1, %v181_v13 }
  0x88   : > { %v186_v14 = vpop.permute.xlu0 %185 }
  0xda   : > { %v265_v15 = vpop.f32.mrf.mxu0 }
  0xdb   : > { %v266_v16 = vadd.f32 %v265_v15, %v186_v14 }
  0xdc   : > { %v267_v17 = vpop.f32.mrf.mxu0 }
  0xdd   : > { %v268_v18 = vadd.f32 %v267_v17, %v186_v14  ;;  %v270_v19 = vsel %vm192_vm0, %v266_v16, 0.0 }
  0xdf   : > { %v271_v20 = vsel %vm192_vm0, %v268_v18, 0.0 }
  0xe0   : > { %v272_v21 = vadd.f32 %v271_v20, %v270_v19 }
  0xe2   : > { %273 = vadd.xlane.f32.xlu0 %v272_v21 }
 0x16b   : > { %v274_v22 = vpop.xlane.xlu0 %273 }
 0x16c   : > { %v276_v23 = vmul.f32 0.00390625, %v274_v22 }
 0x16e   : > { %v277_v24 = vsub.f32 %v266_v16, %v276_v23  ;;  %v278_v25 = vsub.f32 %v268_v18, %v276_v23 }
 0x170   : > { %v279_v26 = vmul.f32 %v277_v24, %v277_v24  ;;  %v280_v27 = vmul.f32 %v278_v25, %v278_v25 }
 0x172   : > { %v281_v28 = vsel %vm192_vm0, %v279_v26, 0.0  ;;  %v282_v29 = vsel %vm192_vm0, %v280_v27, 0.0 }
 0x173   : > { %v283_v30 = vadd.f32 %v282_v29, %v281_v28 }
 0x175   : > { %284 = vadd.xlane.f32.xlu1 %v283_v30 }
 0x1fe   : > { %v285_v31 = vpop.xlane.xlu1 %284 }
 0x1ff   : > { %v286_v32 = vmul.f32 0.00390625, %v285_v31 }
 0x201   : > { %v287_v33 = vadd.f32 1e-05, %v286_v32 }
 0x203   : > { %379 = vrsqrt.f32 %v287_v33 }
 0x210   : > { %v380_v34 = vpop.eup %379 }
 0x211   : > { %v289_v35 = vmul.f32 %v380_v34, %v277_v24  ;;  %v290_v36 = vmul.f32 %v380_v34, %v278_v25 }
 0x213   : > { %v291_v37 = vmax.f32 %v289_v35, 0.0  ;;  %v292_v38 = vmax.f32 %v290_v36, 0.0 }
 0x215   : > { %v295_v39 = vcombine.low %v291_v37, %v292_v38 }
 0x217   : > { %297 = vst [vmem:[%s170_s25] sm:$0xff] %v295_v39 }
 0x218 PF: > { %s13_s12 = sadd.s32 1, %s387_s12  }
 0x219   : > { %p10_p4 = scmp.ge.s32.totalorder %s13_s12, 4  }
 0x21b   :  { %12 = sbr.rel (!%p10_p4) target bundleno = 1 (0x1), region = 62 }

// kernel: resblock_forward.3
= control target key start
LH: loop header
LB: loop body
LE: loop exit
PB: predicated region body
PF: predicated region fallthrough
CT: control target
= control target key end

     0   :  { %s483_s15 = smov 0   ;;  %s519_s0 = inlined_call_operand.vmem [shape: f32[2,36,256], index: 0, kind: input, shape index: {}]   ;;  %s520_s1 = inlined_call_operand.vmem [shape: f32[4,36], index: 1, kind: input, shape index: {}]   ;;  %s521_s2 = inlined_call_operand.vmem [shape: f32[4,1], index: 2, kind: input, shape index: {}]   ;;  %s522_s3 = inlined_call_operand.vmem [shape: f32[2,4,256], index: 3, kind: input, shape index: {}]   ;;  %s523_s4 = inlined_call_operand.vmem [shape: f32[2,4,256], index: 4, kind: output, shape index: {}]  }
   0x1 LB: > { %s416_s16 = sadd.s32 4294967295, %s454_s15   ;;  %p420_p0 = scmp.ge.s32.totalorder %s454_s15, 1  ;;  %s454_s15 = sphi %s483_s15, %s14_s15  }
   0x2   : > { %p172_p1 = scmp.lt.s32.totalorder %s454_s15, 3 }
   0x4   : > { %p173_p2 = pnand %p420_p0, %p172_p1 }
   0x5   : > { %p203_p3 = scmp.lt.s32.totalorder (!%p173_p2), %s416_s16, 1 }
   0x6   : > { %176 = sbr.rel (%p173_p2) target bundleno = 536 (0x218), region = 36 }
   0xb   : > { %v456_v0 = vmov 0.0   ;;  %v229_v1 = vld [vmem:[%s521_s2] sm:$0xf]  ;;  %s525_s16 = smov (!%p203_p3, %s416_s16), 1  ;;  %v457_v2 = vmov 0   ;;  %vm239_vm0 = vcmask 1043456  }
   0xc   : > { %310 = vmatprep.mubr.f32.mxu0 %v456_v0  ;;  %444 = vset.pattern.permute.xlu0 %v457_v2  ;;  %s433_s19 = smul.u32 80, %s525_s16  ;;  %v228_v13 = vld [vmem:[%s520_s1] sm:$0xf]  ;;  %vm235_vm1 = vcmask 293888   ;;  %s431_s25 = sshll.u32 %s525_s16, 3 }
   0xd   : > { %232 = vperm.xlu0 %444, %v229_v1   ;;  %s212_s28 = scalar_lea.vmem %s522_s3, %s431_s25  ;;  %s217_s5 = scalar_lea.vmem %s523_s4, %s431_s25 }
   0xe   : > { %s207_s22 = scalar_lea.vmem %s519_s0, %s433_s19  ;;  %v338_v34 = vld [vmem:[%s212_s28] sm:$0xff] }
   0xf   : > { %v227_v3 = vld [vmem:[%s207_s22 + $0x48] sm:$0xf]  ;;  %v226_v4 = vld [vmem:[%s207_s22 + $0x40] sm:$0xf]  ;;  %v225_v5 = vld [vmem:[%s207_s22 + $0x38] sm:$0xff]  ;;  %v340_v35 = vcombine.high %v338_v34, %v338_v34 }
  0x10   : > { %426 = vmatprep.subr.msk.mxu0 %vm239_vm0, %v227_v3  ;;  %v224_v6 = vld [vmem:[%s207_s22 + $0x30] sm:$0xff]  ;;  %v223_v7 = vld [vmem:[%s207_s22 + $0x28] sm:$0xff]  ;;  %v222_v8 = vld [vmem:[%s207_s22 + $0x20] sm:$0xff] }
  0x11   : > { %427 = vmatpush1.msk.msra.mxu0 %vm239_vm0, %v226_v4  ;;  %v221_v9 = vld [vmem:[%s207_s22 + $0x18] sm:$0xff]  ;;  %v220_v10 = vld [vmem:[%s207_s22 + $0x10] sm:$0xff]  ;;  %v219_v11 = vld [vmem:[%s207_s22 + $0x8] sm:$0xff] }
  0x12   : > { %270 = vmatprep.subr.mxu0 %v225_v5  ;;  %v218_v12 = vld [vmem:[%s207_s22] sm:$0xff] }
  0x13   : > { %271 = vmatpush1.msra.mxu0 %v224_v6 }
  0x14   : > { %272 = vmatprep.subr.mxu0 %v223_v7 }
  0x15   : > { %273 = vmatpush1.msra.mxu0 %v222_v8 }
  0x16   : > { %274 = vmatprep.subr.mxu0 %v221_v9 }
  0x17   : > { %275 = vmatpush1.msra.mxu0 %v220_v10 }
  0x18   : > { %276 = vmatprep.subr.mxu0 %v219_v11 }
  0x19   : > { %277 = vmatpush1.msra.mxu0 %v218_v12 }
  0x1a   : > { %428 = vmatmul.mubr.msk.f32.vlgmr.msra.gmra.mxu0 %vm235_vm1, %v228_v13 }
  0x88   : > { %v233_v14 = vpop.permute.xlu0 %232 }
  0xda   : > { %v312_v15 = vpop.f32.mrf.mxu0 }
  0xdb   : > { %v313_v16 = vadd.f32 %v312_v15, %v233_v14 }
  0xdc   : > { %v314_v17 = vpop.f32.mrf.mxu0 }
  0xdd   : > { %v315_v18 = vadd.f32 %v314_v17, %v233_v14  ;;  %v317_v19 = vsel %vm239_vm0, %v313_v16, 0.0 }
  0xdf   : > { %v318_v20 = vsel %vm239_vm0, %v315_v18, 0.0 }
  0xe0   : > { %v319_v21 = vadd.f32 %v318_v20, %v317_v19 }
  0xe2   : > { %320 = vadd.xlane.f32.xlu0 %v319_v21 }
 0x16b   : > { %v321_v22 = vpop.xlane.xlu0 %320 }
 0x16c   : > { %v323_v23 = vmul.f32 0.00390625, %v321_v22 }
 0x16e   : > { %v324_v24 = vsub.f32 %v313_v16, %v323_v23  ;;  %v325_v25 = vsub.f32 %v315_v18, %v323_v23 }
 0x170   : > { %v326_v26 = vmul.f32 %v324_v24, %v324_v24  ;;  %v327_v27 = vmul.f32 %v325_v25, %v325_v25 }
 0x172   : > { %v328_v28 = vsel %vm239_vm0, %v326_v26, 0.0  ;;  %v329_v29 = vsel %vm239_vm0, %v327_v27, 0.0 }
 0x173   : > { %v330_v30 = vadd.f32 %v329_v29, %v328_v28 }
 0x175   : > { %331 = vadd.xlane.f32.xlu1 %v330_v30 }
 0x1fe   : > { %v332_v31 = vpop.xlane.xlu1 %331 }
 0x1ff   : > { %v333_v32 = vmul.f32 0.00390625, %v332_v31 }
 0x201   : > { %v334_v33 = vadd.f32 1e-05, %v333_v32 }
 0x203   : > { %446 = vrsqrt.f32 %v334_v33 }
 0x210   : > { %v447_v36 = vpop.eup %446 }
 0x211   : > { %v336_v37 = vmul.f32 %v447_v36, %v324_v24  ;;  %v337_v38 = vmul.f32 %v447_v36, %v325_v25 }
 0x213   : > { %v342_v39 = vadd.f32 %v338_v34, %v336_v37  ;;  %v343_v40 = vadd.f32 %v340_v35, %v337_v38 }
 0x215   : > { %v346_v41 = vcombine.low %v342_v39, %v343_v40 }
 0x217   : > { %348 = vst [vmem:[%s217_s5] sm:$0xff] %v346_v41 }
 0x218 PF: > { %s14_s15 = sadd.s32 1, %s454_s15  }
 0x219   : > { %p11_p4 = scmp.ge.s32.totalorder %s14_s15, 4  }
 0x21b   :  { %13 = sbr.rel (!%p11_p4) target bundleno = 1 (0x1), region = 69 }

</bundles_post_ra>
